<compile_context>
chip_gen: v7x
topology: tpu7x:2x2x1
jax: 0.10.0
libtpu: 0.0.40
codegen_flags: <defaults>
</compile_context>

<pallas_src>
from functools import partial

import numpy as np
import jax
import jax.numpy as jnp
from jax.experimental import pallas as pl
from jax.experimental.pallas import tpu as pltpu

E_LAMBDA = 1e-4  # SimAM e_lambda


def _sigmoid(x):
    # sigmoid(x) == 0.5*tanh(0.5*x) + 0.5 ; tanh goes to the EUP slot (idle here).
    return 0.5 * jnp.tanh(0.5 * x) + 0.5


def _fusion_kernel(img_ref, inp_ref, mask_ref, w_ref, b_ref, gamma_ref,
                   out_ref, col_ref, *, C, W, HW, TB, conv_dtype):
    # img_ref/inp_ref/out_ref: (TB, C, HW) VMEM blocks (spatial on lanes).
    # mask_ref: (9, HW) f32 precomputed SAME-padding edge masks.
    # w_ref: (outC, 9*2C) im2col weight (conv_dtype); b_ref: (outC, 1) f32.
    # gamma_ref: (1, 1) SMEM scalar.  col_ref: (9, TB*2C, HW) VMEM scratch.
    C2 = 2 * C
    n = HW - 1  # SimAM n = h*w - 1

    img = img_ref[...].astype(jnp.float32)            # (TB, C, HW)
    inp = inp_ref[...].astype(jnp.float32)            # (TB, C, HW)

    # ---- SimAM once on the concatenated slab (fills sublanes: TB*2C rows) ----
    # SimAM is per-(batch, channel); lane reductions over HW.
    e = jnp.concatenate([img, inp], axis=1).reshape(TB * C2, HW)   # (TB*2C, HW)
    mu = jnp.mean(e, axis=1, keepdims=True)                        # (TB*2C, 1)
    xm2 = (e - mu) ** 2
    denom = 4.0 * (jnp.sum(xm2, axis=1, keepdims=True) / n + E_LAMBDA)
    # denom is a single (TB*2C, 1) vreg: exact divide here is negligible VALU
    # work, and keeps bit-level parity with the reference (vs approx rcp).
    y = xm2 * (1.0 / denom) + 0.5
    e = e * _sigmoid(y)                                            # (TB*2C, HW)

    # ---- im2col: 9 lane rolls + precomputed boundary masks -> VMEM scratch ----
    masks = mask_ref[...]                                          # (9, HW) f32
    t = 0
    for oy in (-1, 0, 1):
        for ox in (-1, 0, 1):
            if oy == 0 and ox == 0:
                tap = e
            else:
                k = oy * W + ox                                    # flat offset
                shifted = pltpu.roll(e, shift=(-k) % HW, axis=1)   # XLU, ~free
                tap = shifted * masks[t:t + 1, :]                  # zero "SAME" pad
            col_ref[t] = tap.astype(conv_dtype)                    # (TB*2C, HW)
            t += 1

    # ---- one fused MXU matmul per packed batch + gated output ----------------
    gamma = gamma_ref[0, 0]
    w = w_ref[...]                                                 # (outC, 9*2C)
    b = b_ref[...]                                                 # (outC, 1)
    for bt in range(TB):                                           # TB small, unrolled
        # K-order (dy, dx, ci) matches the OIHW->(O, ky, kx, ci) weight reshape.
        im2col = col_ref[:, bt * C2:(bt + 1) * C2, :].reshape(9 * C2, HW)
        conv = jnp.dot(w, im2col, preferred_element_type=jnp.float32)  # (outC, HW)
        fusion_f = _sigmoid(conv + b)                              # (outC=C, HW)
        # texture_feature = image + gamma * (fusion_f * inpaint)
        out_ref[bt] = (img[bt] + gamma * (fusion_f * inp[bt])).astype(out_ref.dtype)


def _pick_batch_block(B, max_steps=2):
    # Keep >= min(B, max_steps) grid steps (one per TensorCore on v7x), fold the
    # rest of the batch into each step to amortize per-grid-step overhead.
    steps = min(B, max_steps)
    while B % steps:
        steps += 1
    return B // steps


def fusion_layer(image_feature, inpaint_feature, weight, bias, gamma,
                 *, conv_dtype=jnp.bfloat16, batch_block=None):
    """image_feature, inpaint_feature: (B, C, H, W) NCHW (PyTorch convention).
    weight: (outC, 2C, 3, 3) OIHW; bias: (outC,); gamma: (1,).
    conv_dtype=bfloat16 (default) uses bf16 MXU operands with f32 accumulation
    (native on v5e, ~2x on v6e/v7x); pass float32 for exact-parity numerics."""
    B, C, H, W = image_feature.shape
    out_c = weight.shape[0]
    assert out_c == C, "elementwise gate requires out_channels == in_channels"
    HW = H * W

    if batch_block is None:
        batch_block = _pick_batch_block(B)
    assert B % batch_block == 0
    TB = batch_block
    num_steps = B // TB

    # Free reshapes (no transpose / HBM round-trip): spatial flattened onto lanes.
    img = image_feature.reshape(B, C, HW)
    inp = inpaint_feature.reshape(B, C, HW)

    # OIHW -> (O, ky, kx, ci) -> (O, 9*2C); K ordered (dy, dx, ci) to match im2col.
    # Cast to conv_dtype in the wrapper so it is DMA'd narrow.
    w2d = jnp.transpose(weight, (0, 2, 3, 1)).reshape(out_c, 9 * 2 * C).astype(conv_dtype)
    b2 = bias.reshape(out_c, 1).astype(jnp.float32)
    g2 = gamma.reshape(1, 1).astype(jnp.float32)

    # Precompute the 9 SAME-padding edge masks once (compile-time constants).
    p = np.arange(HW, dtype=np.int32)
    px, py = p % W, p // W
    mask_rows = []
    for oy in (-1, 0, 1):
        for ox in (-1, 0, 1):
            mask_rows.append(((py + oy >= 0) & (py + oy < H) &
                              (px + ox >= 0) & (px + ox < W)).astype(np.float32))
    masks = jnp.asarray(np.stack(mask_rows, axis=0))               # (9, HW)

    kernel = partial(_fusion_kernel, C=C, W=W, HW=HW, TB=TB, conv_dtype=conv_dtype)

    # TODO(synk): for much larger C/H*W, tile HW with a second grid axis and set
    # vmem_limit_bytes (the 9x im2col scratch hits v7x's 64 MiB VMEM first).
    out_flat = pl.pallas_call(
        kernel,
        out_shape=jax.ShapeDtypeStruct((B, C, HW), image_feature.dtype),
        grid=(num_steps,),
        in_specs=[
            pl.BlockSpec((TB, C, HW), lambda s: (s, 0, 0)),
            pl.BlockSpec((TB, C, HW), lambda s: (s, 0, 0)),
            pl.BlockSpec((9, HW), lambda s: (0, 0)),
            pl.BlockSpec((out_c, 9 * 2 * C), lambda s: (0, 0)),
            pl.BlockSpec((out_c, 1), lambda s: (0, 0)),
            pl.BlockSpec(memory_space=pltpu.MemorySpace.SMEM),
        ],
        out_specs=pl.BlockSpec((TB, C, HW), lambda s: (s, 0, 0)),
        scratch_shapes=[pltpu.VMEM((9, TB * 2 * C, HW), conv_dtype)],
        compiler_params=pltpu.CompilerParams(
            # >= 2 grid steps are kept above so the batch axis shards across
            # both v7x TensorCores; harmless on single-TC v5e/v6e.
            dimension_semantics=("parallel",)),
    )(img, inp, masks, w2d, b2, g2)

    return out_flat.reshape(B, C, H, W)


def fusion_layer_ref(image_feature, inpaint_feature, weight, bias, gamma):
    """Pure-JAX reference mirroring the PyTorch forward (for verification)."""
    energy = jnp.concatenate([image_feature, inpaint_feature], axis=1)  # NCHW
    b, c, h, w = energy.shape
    n = h * w - 1
    mu = energy.mean(axis=(2, 3), keepdims=True)
    xm2 = (energy - mu) ** 2
    y = xm2 / (4 * (xm2.sum(axis=(2, 3), keepdims=True) / n + E_LAMBDA)) + 0.5
    energy = energy * jax.nn.sigmoid(y)
    conv = jax.lax.conv_general_dilated(
        energy, weight, window_strides=(1, 1), padding="SAME",
        dimension_numbers=("NCHW", "OIHW", "NCHW"))
    fusion_f = jax.nn.sigmoid(conv + bias.reshape(1, -1, 1, 1))
    return image_feature + gamma.reshape(()) * (fusion_f * inpaint_feature)


if __name__ == "__main__":
    B, C, H, W = 2, 4, 16, 16
    out_c = C  # must equal C for the elementwise gate (as in the module usage)

    key = jax.random.PRNGKey(0)
    k1, k2, k3, k4 = jax.random.split(key, 4)
    image_feature = jax.random.normal(k1, (B, C, H, W), jnp.float32)
    inpaint_feature = jax.random.normal(k2, (B, C, H, W), jnp.float32)
    # Conv2d(2C -> outC, 3x3) parameters, deterministic synthetic init.
    conv_w = 0.1 * jax.random.normal(k3, (out_c, 2 * C, 3, 3), jnp.float32)
    conv_b = 0.1 * jax.random.normal(k4, (out_c,), jnp.float32)
    # PyTorch inits texture_gamma to 0 (output == image_feature); use a nonzero
    # deterministic value so the full fused path is exercised.
    gamma = jnp.array([0.5], jnp.float32)

    ref = fusion_layer_ref(image_feature, inpaint_feature, conv_w, conv_b, gamma)

    # Full-precision path: tight check against the pure-JAX reference.
    out_f32 = jax.block_until_ready(
        fusion_layer(image_feature, inpaint_feature, conv_w, conv_b, gamma,
                     conv_dtype=jnp.float32))
    assert out_f32.shape == (B, C, H, W)
    assert jnp.allclose(out_f32, ref, rtol=1e-4, atol=1e-4), (
        float(jnp.max(jnp.abs(out_f32 - ref))))

    # Default path (bf16 MXU operands, f32 accumulate): looser tolerance.
    out_bf16 = jax.block_until_ready(
        fusion_layer(image_feature, inpaint_feature, conv_w, conv_b, gamma))
    assert out_bf16.shape == (B, C, H, W)
    assert jnp.allclose(out_bf16, ref, rtol=3e-2, atol=3e-2), (
        float(jnp.max(jnp.abs(out_bf16 - ref))))

    print("KERNEL_OK")
</pallas_src>

<mosaic_0001>
module attributes {stable_mosaic.version = 11 : i64} {
  func.func @_fusion_kernel(%arg0: i32, %arg1: memref<1x4x256xf32, #tpu.memory_space<vmem>>, %arg2: memref<1x4x256xf32, #tpu.memory_space<vmem>>, %arg3: memref<9x256xf32, #tpu.memory_space<vmem>>, %arg4: memref<4x72xf32, #tpu.memory_space<vmem>>, %arg5: memref<4x1xf32, #tpu.memory_space<vmem>>, %arg6: memref<1x1xf32, #tpu.memory_space<smem>>, %arg7: memref<1x4x256xf32, #tpu.memory_space<vmem>>, %arg8: memref<9x8x256xf32, #tpu.memory_space<vmem>>) attributes {dimension_semantics = [#tpu.dimension_semantics<parallel>], iteration_bounds = array<i64: 2>, scalar_prefetch = 0 : i64, scratch_operands = 1 : i64, tpu.core_type = #tpu.core_type<tc>, window_params = [{transform_indices = @transform_0, window_bounds = array<i64: 1, 4, 256>}, {transform_indices = @transform_1, window_bounds = array<i64: 1, 4, 256>}, {pipeline_mode = #tpu.pipeline_mode<synchronous>, transform_indices = @transform_2, window_bounds = array<i64: 9, 256>}, {pipeline_mode = #tpu.pipeline_mode<synchronous>, transform_indices = @transform_3, window_bounds = array<i64: 4, 72>}, {pipeline_mode = #tpu.pipeline_mode<synchronous>, transform_indices = @transform_4, window_bounds = array<i64: 4, 1>}, {transform_indices = @transform_5, window_bounds = array<i64: 1, 1>}, {transform_indices = @transform_6, window_bounds = array<i64: 1, 4, 256>}]} {
    %c0 = arith.constant 0 : index
    %c0_0 = arith.constant 0 : index
    %c0_1 = arith.constant 0 : index
    %0 = vector.load %arg1[%c0, %c0_0, %c0_1] : memref<1x4x256xf32, #tpu.memory_space<vmem>>, vector<1x4x256xf32>
    %c0_2 = arith.constant 0 : index
    %c0_3 = arith.constant 0 : index
    %c0_4 = arith.constant 0 : index
    %1 = vector.load %arg2[%c0_2, %c0_3, %c0_4] : memref<1x4x256xf32, #tpu.memory_space<vmem>>, vector<1x4x256xf32>
    %2 = tpu.concatenate %0, %1 in 1 : vector<1x4x256xf32>, vector<1x4x256xf32> -> vector<1x8x256xf32>
    %3 = vector.shape_cast %2 : vector<1x8x256xf32> to vector<8x256xf32>
    %cst = arith.constant dense<0.000000e+00> : vector<8xf32>
    %4 = vector.multi_reduction <add>, %3, %cst [1] : vector<8x256xf32> to vector<8xf32>
    %5 = vector.shape_cast %4 : vector<8xf32> to vector<8x1xf32>
    %cst_5 = arith.constant 2.560000e+02 : f32
    %6 = vector.broadcast %cst_5 : f32 to vector<8x1xf32>
    %7 = arith.divf %5, %6 : vector<8x1xf32>
    %8 = vector.broadcast %7 : vector<8x1xf32> to vector<8x256xf32>
    %9 = arith.subf %3, %8 : vector<8x256xf32>
    %10 = arith.mulf %9, %9 : vector<8x256xf32>
    %cst_6 = arith.constant dense<0.000000e+00> : vector<8xf32>
    %11 = vector.multi_reduction <add>, %10, %cst_6 [1] : vector<8x256xf32> to vector<8xf32>
    %12 = vector.shape_cast %11 : vector<8xf32> to vector<8x1xf32>
    %cst_7 = arith.constant 2.550000e+02 : f32
    %13 = vector.broadcast %cst_7 : f32 to vector<8x1xf32>
    %14 = arith.divf %12, %13 : vector<8x1xf32>
    %cst_8 = arith.constant 9.99999974E-5 : f32
    %15 = vector.broadcast %cst_8 : f32 to vector<8x1xf32>
    %16 = arith.addf %14, %15 : vector<8x1xf32>
    %cst_9 = arith.constant 4.000000e+00 : f32
    %17 = vector.broadcast %cst_9 : f32 to vector<8x1xf32>
    %18 = arith.mulf %17, %16 : vector<8x1xf32>
    %cst_10 = arith.constant 1.000000e+00 : f32
    %19 = vector.broadcast %cst_10 : f32 to vector<8x1xf32>
    %20 = arith.divf %19, %18 : vector<8x1xf32>
    %21 = vector.broadcast %20 : vector<8x1xf32> to vector<8x256xf32>
    %22 = arith.mulf %10, %21 : vector<8x256xf32>
    %cst_11 = arith.constant 5.000000e-01 : f32
    %23 = vector.broadcast %cst_11 : f32 to vector<8x256xf32>
    %24 = arith.addf %22, %23 : vector<8x256xf32>
    %cst_12 = arith.constant 5.000000e-01 : f32
    %25 = vector.broadcast %cst_12 : f32 to vector<8x256xf32>
    %26 = arith.mulf %25, %24 : vector<8x256xf32>
    %27 = math.tanh %26 : vector<8x256xf32>
    %cst_13 = arith.constant 5.000000e-01 : f32
    %28 = vector.broadcast %cst_13 : f32 to vector<8x256xf32>
    %29 = arith.mulf %28, %27 : vector<8x256xf32>
    %cst_14 = arith.constant 5.000000e-01 : f32
    %30 = vector.broadcast %cst_14 : f32 to vector<8x256xf32>
    %31 = arith.addf %29, %30 : vector<8x256xf32>
    %32 = arith.mulf %3, %31 : vector<8x256xf32>
    %c0_15 = arith.constant 0 : index
    %c0_16 = arith.constant 0 : index
    %33 = vector.load %arg3[%c0_15, %c0_16] : memref<9x256xf32, #tpu.memory_space<vmem>>, vector<9x256xf32>
    %c17_i32 = arith.constant 17 : i32
    %34 = tpu.dynamic_rotate %32 by %c17_i32 dim 1 : vector<8x256xf32>, i32 -> vector<8x256xf32>
    %35 = vector.extract_strided_slice %33 {offsets = [0, 0], sizes = [1, 256], strides = [1, 1]} : vector<9x256xf32> to vector<1x256xf32>
    %36 = vector.broadcast %35 : vector<1x256xf32> to vector<8x256xf32>
    %37 = arith.mulf %34, %36 : vector<8x256xf32>
    %c0_17 = arith.constant 0 : index
    %c0_18 = arith.constant 0 : index
    %c0_19 = arith.constant 0 : index
    %38 = vector.load %arg8[%c0_17, %c0_18, %c0_19] : memref<9x8x256xf32, #tpu.memory_space<vmem>>, vector<1x8x256xf32>
    %39 = vector.shape_cast %38 : vector<1x8x256xf32> to vector<8x256xf32>
    %40 = vector.shape_cast %37 : vector<8x256xf32> to vector<1x8x256xf32>
    tpu.vector_store %arg8[%c0_17, %c0_18, %c0_19], %40 {strides = array<i32>} : memref<9x8x256xf32, #tpu.memory_space<vmem>>, vector<1x8x256xf32>,
    %c16_i32 = arith.constant 16 : i32
    %41 = tpu.dynamic_rotate %32 by %c16_i32 dim 1 : vector<8x256xf32>, i32 -> vector<8x256xf32>
    %42 = vector.extract_strided_slice %33 {offsets = [1, 0], sizes = [1, 256], strides = [1, 1]} : vector<9x256xf32> to vector<1x256xf32>
    %43 = vector.broadcast %42 : vector<1x256xf32> to vector<8x256xf32>
    %44 = arith.mulf %41, %43 : vector<8x256xf32>
    %c1 = arith.constant 1 : index
    %c0_20 = arith.constant 0 : index
    %c0_21 = arith.constant 0 : index
    %45 = vector.load %arg8[%c1, %c0_20, %c0_21] : memref<9x8x256xf32, #tpu.memory_space<vmem>>, vector<1x8x256xf32>
    %46 = vector.shape_cast %45 : vector<1x8x256xf32> to vector<8x256xf32>
    %47 = vector.shape_cast %44 : vector<8x256xf32> to vector<1x8x256xf32>
    tpu.vector_store %arg8[%c1, %c0_20, %c0_21], %47 {strides = array<i32>} : memref<9x8x256xf32, #tpu.memory_space<vmem>>, vector<1x8x256xf32>,
    %c15_i32 = arith.constant 15 : i32
    %48 = tpu.dynamic_rotate %32 by %c15_i32 dim 1 : vector<8x256xf32>, i32 -> vector<8x256xf32>
    %49 = vector.extract_strided_slice %33 {offsets = [2, 0], sizes = [1, 256], strides = [1, 1]} : vector<9x256xf32> to vector<1x256xf32>
    %50 = vector.broadcast %49 : vector<1x256xf32> to vector<8x256xf32>
    %51 = arith.mulf %48, %50 : vector<8x256xf32>
    %c2 = arith.constant 2 : index
    %c0_22 = arith.constant 0 : index
    %c0_23 = arith.constant 0 : index
    %52 = vector.load %arg8[%c2, %c0_22, %c0_23] : memref<9x8x256xf32, #tpu.memory_space<vmem>>, vector<1x8x256xf32>
    %53 = vector.shape_cast %52 : vector<1x8x256xf32> to vector<8x256xf32>
    %54 = vector.shape_cast %51 : vector<8x256xf32> to vector<1x8x256xf32>
    tpu.vector_store %arg8[%c2, %c0_22, %c0_23], %54 {strides = array<i32>} : memref<9x8x256xf32, #tpu.memory_space<vmem>>, vector<1x8x256xf32>,
    %c1_i32 = arith.constant 1 : i32
    %55 = tpu.dynamic_rotate %32 by %c1_i32 dim 1 : vector<8x256xf32>, i32 -> vector<8x256xf32>
    %56 = vector.extract_strided_slice %33 {offsets = [3, 0], sizes = [1, 256], strides = [1, 1]} : vector<9x256xf32> to vector<1x256xf32>
    %57 = vector.broadcast %56 : vector<1x256xf32> to vector<8x256xf32>
    %58 = arith.mulf %55, %57 : vector<8x256xf32>
    %c3 = arith.constant 3 : index
    %c0_24 = arith.constant 0 : index
    %c0_25 = arith.constant 0 : index
    %59 = vector.load %arg8[%c3, %c0_24, %c0_25] : memref<9x8x256xf32, #tpu.memory_space<vmem>>, vector<1x8x256xf32>
    %60 = vector.shape_cast %59 : vector<1x8x256xf32> to vector<8x256xf32>
    %61 = vector.shape_cast %58 : vector<8x256xf32> to vector<1x8x256xf32>
    tpu.vector_store %arg8[%c3, %c0_24, %c0_25], %61 {strides = array<i32>} : memref<9x8x256xf32, #tpu.memory_space<vmem>>, vector<1x8x256xf32>,
    %c4 = arith.constant 4 : index
    %c0_26 = arith.constant 0 : index
    %c0_27 = arith.constant 0 : index
    %62 = vector.load %arg8[%c4, %c0_26, %c0_27] : memref<9x8x256xf32, #tpu.memory_space<vmem>>, vector<1x8x256xf32>
    %63 = vector.shape_cast %62 : vector<1x8x256xf32> to vector<8x256xf32>
    %64 = vector.shape_cast %32 : vector<8x256xf32> to vector<1x8x256xf32>
    tpu.vector_store %arg8[%c4, %c0_26, %c0_27], %64 {strides = array<i32>} : memref<9x8x256xf32, #tpu.memory_space<vmem>>, vector<1x8x256xf32>,
    %c255_i32 = arith.constant 255 : i32
    %65 = tpu.dynamic_rotate %32 by %c255_i32 dim 1 : vector<8x256xf32>, i32 -> vector<8x256xf32>
    %66 = vector.extract_strided_slice %33 {offsets = [5, 0], sizes = [1, 256], strides = [1, 1]} : vector<9x256xf32> to vector<1x256xf32>
    %67 = vector.broadcast %66 : vector<1x256xf32> to vector<8x256xf32>
    %68 = arith.mulf %65, %67 : vector<8x256xf32>
    %c5 = arith.constant 5 : index
    %c0_28 = arith.constant 0 : index
    %c0_29 = arith.constant 0 : index
    %69 = vector.load %arg8[%c5, %c0_28, %c0_29] : memref<9x8x256xf32, #tpu.memory_space<vmem>>, vector<1x8x256xf32>
    %70 = vector.shape_cast %69 : vector<1x8x256xf32> to vector<8x256xf32>
    %71 = vector.shape_cast %68 : vector<8x256xf32> to vector<1x8x256xf32>
    tpu.vector_store %arg8[%c5, %c0_28, %c0_29], %71 {strides = array<i32>} : memref<9x8x256xf32, #tpu.memory_space<vmem>>, vector<1x8x256xf32>,
    %c241_i32 = arith.constant 241 : i32
    %72 = tpu.dynamic_rotate %32 by %c241_i32 dim 1 : vector<8x256xf32>, i32 -> vector<8x256xf32>
    %73 = vector.extract_strided_slice %33 {offsets = [6, 0], sizes = [1, 256], strides = [1, 1]} : vector<9x256xf32> to vector<1x256xf32>
    %74 = vector.broadcast %73 : vector<1x256xf32> to vector<8x256xf32>
    %75 = arith.mulf %72, %74 : vector<8x256xf32>
    %c6 = arith.constant 6 : index
    %c0_30 = arith.constant 0 : index
    %c0_31 = arith.constant 0 : index
    %76 = vector.load %arg8[%c6, %c0_30, %c0_31] : memref<9x8x256xf32, #tpu.memory_space<vmem>>, vector<1x8x256xf32>
    %77 = vector.shape_cast %76 : vector<1x8x256xf32> to vector<8x256xf32>
    %78 = vector.shape_cast %75 : vector<8x256xf32> to vector<1x8x256xf32>
    tpu.vector_store %arg8[%c6, %c0_30, %c0_31], %78 {strides = array<i32>} : memref<9x8x256xf32, #tpu.memory_space<vmem>>, vector<1x8x256xf32>,
    %c240_i32 = arith.constant 240 : i32
    %79 = tpu.dynamic_rotate %32 by %c240_i32 dim 1 : vector<8x256xf32>, i32 -> vector<8x256xf32>
    %80 = vector.extract_strided_slice %33 {offsets = [7, 0], sizes = [1, 256], strides = [1, 1]} : vector<9x256xf32> to vector<1x256xf32>
    %81 = vector.broadcast %80 : vector<1x256xf32> to vector<8x256xf32>
    %82 = arith.mulf %79, %81 : vector<8x256xf32>
    %c7 = arith.constant 7 : index
    %c0_32 = arith.constant 0 : index
    %c0_33 = arith.constant 0 : index
    %83 = vector.load %arg8[%c7, %c0_32, %c0_33] : memref<9x8x256xf32, #tpu.memory_space<vmem>>, vector<1x8x256xf32>
    %84 = vector.shape_cast %83 : vector<1x8x256xf32> to vector<8x256xf32>
    %85 = vector.shape_cast %82 : vector<8x256xf32> to vector<1x8x256xf32>
    tpu.vector_store %arg8[%c7, %c0_32, %c0_33], %85 {strides = array<i32>} : memref<9x8x256xf32, #tpu.memory_space<vmem>>, vector<1x8x256xf32>,
    %c239_i32 = arith.constant 239 : i32
    %86 = tpu.dynamic_rotate %32 by %c239_i32 dim 1 : vector<8x256xf32>, i32 -> vector<8x256xf32>
    %87 = vector.extract_strided_slice %33 {offsets = [8, 0], sizes = [1, 256], strides = [1, 1]} : vector<9x256xf32> to vector<1x256xf32>
    %88 = vector.broadcast %87 : vector<1x256xf32> to vector<8x256xf32>
    %89 = arith.mulf %86, %88 : vector<8x256xf32>
    %c8 = arith.constant 8 : index
    %c0_34 = arith.constant 0 : index
    %c0_35 = arith.constant 0 : index
    %90 = vector.load %arg8[%c8, %c0_34, %c0_35] : memref<9x8x256xf32, #tpu.memory_space<vmem>>, vector<1x8x256xf32>
    %91 = vector.shape_cast %90 : vector<1x8x256xf32> to vector<8x256xf32>
    %92 = vector.shape_cast %89 : vector<8x256xf32> to vector<1x8x256xf32>
    tpu.vector_store %arg8[%c8, %c0_34, %c0_35], %92 {strides = array<i32>} : memref<9x8x256xf32, #tpu.memory_space<vmem>>, vector<1x8x256xf32>,
    %c0_36 = arith.constant 0 : index
    %c0_37 = arith.constant 0 : index
    %93 = memref.load %arg6[%c0_36, %c0_37] : memref<1x1xf32, #tpu.memory_space<smem>>
    %c0_38 = arith.constant 0 : index
    %c0_39 = arith.constant 0 : index
    %94 = vector.load %arg4[%c0_38, %c0_39] : memref<4x72xf32, #tpu.memory_space<vmem>>, vector<4x72xf32>
    %c0_40 = arith.constant 0 : index
    %c0_41 = arith.constant 0 : index
    %95 = vector.load %arg5[%c0_40, %c0_41] : memref<4x1xf32, #tpu.memory_space<vmem>>, vector<4x1xf32>
    %c0_42 = arith.constant 0 : index
    %c0_43 = arith.constant 0 : index
    %c0_44 = arith.constant 0 : index
    %96 = vector.load %arg8[%c0_42, %c0_43, %c0_44] : memref<9x8x256xf32, #tpu.memory_space<vmem>>, vector<9x8x256xf32>
    %97 = vector.shape_cast %96 : vector<9x8x256xf32> to vector<72x256xf32>
    %cst_45 = arith.constant dense<0.000000e+00> : vector<4x256xf32>
    %98 = tpu.matmul %94, %97, %cst_45 {dimension_numbers = #tpu.dot_dimension_numbers<[1], [0], [0], [1], [0, 0, 1, 1], [], []>} : vector<4x72xf32>, vector<72x256xf32>, vector<4x256xf32> -> vector<4x256xf32>
    %99 = vector.broadcast %95 : vector<4x1xf32> to vector<4x256xf32>
    %100 = arith.addf %98, %99 : vector<4x256xf32>
    %cst_46 = arith.constant 5.000000e-01 : f32
    %101 = vector.broadcast %cst_46 : f32 to vector<4x256xf32>
    %102 = arith.mulf %101, %100 : vector<4x256xf32>
    %103 = math.tanh %102 : vector<4x256xf32>
    %cst_47 = arith.constant 5.000000e-01 : f32
    %104 = vector.broadcast %cst_47 : f32 to vector<4x256xf32>
    %105 = arith.mulf %104, %103 : vector<4x256xf32>
    %cst_48 = arith.constant 5.000000e-01 : f32
    %106 = vector.broadcast %cst_48 : f32 to vector<4x256xf32>
    %107 = arith.addf %105, %106 : vector<4x256xf32>
    %108 = vector.shape_cast %0 : vector<1x4x256xf32> to vector<4x256xf32>
    %109 = vector.shape_cast %1 : vector<1x4x256xf32> to vector<4x256xf32>
    %110 = arith.mulf %107, %109 : vector<4x256xf32>
    %111 = vector.broadcast %93 : f32 to vector<4x256xf32>
    %112 = arith.mulf %111, %110 : vector<4x256xf32>
    %113 = arith.addf %108, %112 : vector<4x256xf32>
    %c0_49 = arith.constant 0 : index
    %c0_50 = arith.constant 0 : index
    %c0_51 = arith.constant 0 : index
    %114 = vector.load %arg7[%c0_49, %c0_50, %c0_51] : memref<1x4x256xf32, #tpu.memory_space<vmem>>, vector<1x4x256xf32>
    %115 = vector.shape_cast %114 : vector<1x4x256xf32> to vector<4x256xf32>
    %116 = vector.shape_cast %113 : vector<4x256xf32> to vector<1x4x256xf32>
    tpu.vector_store %arg7[%c0_49, %c0_50, %c0_51], %116 {strides = array<i32>} : memref<1x4x256xf32, #tpu.memory_space<vmem>>, vector<1x4x256xf32>,
    return
  }
  func.func @transform_0(%arg0: i32) -> (i32, i32, i32) {
    %c0_i32 = arith.constant 0 : i32
    %c0_i32_0 = arith.constant 0 : i32
    %c0_i32_1 = arith.constant 0 : i32
    return %arg0, %c0_i32, %c0_i32_0 : i32, i32, i32
  }
  func.func @transform_1(%arg0: i32) -> (i32, i32, i32) {
    %c0_i32 = arith.constant 0 : i32
    %c0_i32_0 = arith.constant 0 : i32
    %c0_i32_1 = arith.constant 0 : i32
    return %arg0, %c0_i32, %c0_i32_0 : i32, i32, i32
  }
  func.func @transform_2(%arg0: i32) -> (i32, i32) {
    %c0_i32 = arith.constant 0 : i32
    %c0_i32_0 = arith.constant 0 : i32
    %c0_i32_1 = arith.constant 0 : i32
    return %c0_i32, %c0_i32_0 : i32, i32
  }
  func.func @transform_3(%arg0: i32) -> (i32, i32) {
    %c0_i32 = arith.constant 0 : i32
    %c0_i32_0 = arith.constant 0 : i32
    %c0_i32_1 = arith.constant 0 : i32
    return %c0_i32, %c0_i32_0 : i32, i32
  }
  func.func @transform_4(%arg0: i32) -> (i32, i32) {
    %c0_i32 = arith.constant 0 : i32
    %c0_i32_0 = arith.constant 0 : i32
    %c0_i32_1 = arith.constant 0 : i32
    return %c0_i32, %c0_i32_0 : i32, i32
  }
  func.func @transform_5(%arg0: i32) -> (i32, i32) {
    %c0_i32 = arith.constant 0 : i32
    %c0_i32_0 = arith.constant 0 : i32
    %c0_i32_1 = arith.constant 0 : i32
    return %c0_i32, %c0_i32_0 : i32, i32
  }
  func.func @transform_6(%arg0: i32) -> (i32, i32, i32) {
    %c0_i32 = arith.constant 0 : i32
    %c0_i32_0 = arith.constant 0 : i32
    %c0_i32_1 = arith.constant 0 : i32
    return %arg0, %c0_i32, %c0_i32_0 : i32, i32, i32
  }
}

</mosaic_0001>

<bundles_post_ra>
// kernel: tpu_custom_call.1
= control target key start
LH: loop header
LB: loop body
LE: loop exit
PB: predicated region body
PF: predicated region fallthrough
CT: control target
= control target key end

     0   :  { %s1434_s0 = inlined_call_operand.hbm [shape: f32[2,4,256], index: 0, kind: input, shape index: {}]   ;;  %s1435_s1 = inlined_call_operand.hbm [shape: f32[2,4,256], index: 1, kind: input, shape index: {}]   ;;  %s1436_s2 = inlined_call_operand.hbm [shape: f32[9,256], index: 2, kind: input, shape index: {}]   ;;  %s1437_s3 = inlined_call_operand.vmem [shape: f32[4,72], index: 3, kind: input, shape index: {}]   ;;  %s1438_s4 = inlined_call_operand.vmem [shape: f32[4,1], index: 4, kind: input, shape index: {}]   ;;  %s1439_s5 = inlined_call_operand.<no memory space> [shape: f32[1,1], index: 5, kind: input, shape index: {}]   ;;  %s1440_s6 = inlined_call_operand.hbm [shape: f32[2,4,256], index: 6, kind: output, shape index: {}]  }
   0x1   :  { %1445 = sst [smem:[#allocation16_spill]] %s1436_s2 }
   0x2   :  { %11 = sst [smem:[#allocation3]] %s1439_s5 }
   0x3   :  { %12 = vsyncpa [#allocation5], 0 }
   0x4   :  { %14 = vsyncpa [#allocation5 + $0x1], 0 }
   0x5   :  { %15 = vsyncpa [#allocation8], 0 }
   0x6   :  { %17 = vsyncpa [#allocation8 + $0x1], 0 }
   0x7   :  { %18 = vsyncpa [#allocation6], 0 }
   0x8   :  { %20 = vsyncpa [#allocation6 + $0x1], 0  ;;  %s1120_s23 = smov 0   ;;  %s1122_s24 = smov 0  }
   0x9   :  { %s1124_s25 = smov 0   ;;  %s1126_s26 = smov 0  }
   0xa LB: > { %s1141_s5 = sadd.s32 4294967295, %s1064_s26   ;;  %s771_s27 = sadd.s32 4294967294, %s1064_s26   ;;  %s1064_s26 = sphi %s1126_s26, %s1466_s26   ;;  %s1060_s25 = sphi %s1124_s25, %s1465_s25   ;;  %s1056_s24 = sphi %s1122_s24, %s1464_s24   ;;  %s1052_s23 = sphi %s1120_s23, %s1463_s23  }
   0xb   : > { %p46_p0 = scmp.ne.s32.totalorder %s1056_s24, %s1052_s23  ;;  %p1441_p1 = scmp.eq.s32.totalorder %s1141_s5, 0 }
   0xc   : > { %p186_p3 = scmp.eq.s32.totalorder %s771_s27, 1  ;;  %p772_p5 = scmp.ge.s32.totalorder %s1064_s26, 1 }
   0xd   : > { %p1150_p4 = por %p1441_p1, %p46_p0  ;;  %p193_p7 = scmp.lt.s32.totalorder %s1064_s26, 3 }
   0xe   : > { %p1155_p6 = por %p186_p3, %p46_p0  ;;  %s1066_s7 = smov [#allocation9]  }
   0xf   : > { %s1446_s28 = scalar_select %p1150_p4, 1, 0 }
  0x10   : > { %s1447_s29 = scalar_select %p1155_p6, 1, 0 }
  0x11   : > { %p1160_p8 = pnand %p772_p5, %p193_p7  ;;  %s205_s8 = sshll.u32 %s1066_s7, 4  ;;  %s1164_s8 = int_to_ptr.vmem [resolvable:$true] %s205_s8 }
  0x12   : > { %s1176_s10 = sadd.s32 1, %s1064_s26   ;;  %s33_s11 = sadd.s32 1, %s1060_s25 }
  0x13   : > { %s1448_s30 = scalar_select %p1160_p8, 1, 0 }
  0x14   : > { %p823_p9 = pneg %p1160_p8  ;;  %s30_s12 = ssub.s32 %s1064_s26, %s1176_s10 }
  0x15   : > { %s1450_s2 = sld [smem:[#allocation16_spill]] }
  0x16   : > { %p1171_p11 = pnand %p823_p9, %p1441_p1 }
  0x18   : > { %p904_p13 = pneg %p1171_p11 }
  0x1b   : > { %s902_s15 = scalar_lea.hbm %s1450_s2, 512 }
  0x1c   : > { %p903_p12 = scmp.ne.s32.totalorder %s1450_s2, %s902_s15  ;;  %p909_p5 = scmp.lt.u32.totalorder %s902_s15, %s1450_s2 }
  0x1e   : > { %p905_p0 = pnand %p904_p13, %p903_p12 }
  0x20   : > { %p906_p3 = pneg %p905_p0 }
  0x22   : > { %p911_p7 = pnand %p909_p5, %p906_p3 }
  0x24   : > { %914 = shalt.err (!%p911_p7)
}
  0x25   : > { %s915_s20 = scalar_lea.vmem %s1164_s8, 512  ;;  %p923_p2 = scmp.lt.s32.totalorder %s1164_s8, %s1164_s8 }
  0x26   : > { %p916_p9 = scmp.ne.s32.totalorder %s1164_s8, %s915_s20  ;;  %p924_p6 = scmp.lt.s32.totalorder %s915_s20, %s915_s20 }
  0x28   : > { %p918_p10 = pnand %p916_p9, %p904_p13  ;;  %p925_p4 = por %p924_p6, %p923_p2 }
  0x2a   : > { %p919_p1 = pneg %p918_p10 }
  0x2c   : > { %p926_p8 = pnand %p925_p4, %p919_p1 }
  0x2e   : > { %929 = shalt.err (!%p926_p8)
}
  0x2f   : > { %s1067_s21 = smov 256   ;;  %s1068_s22 = smov 16  }
  0x30   : > { %826 = dma.hbm_to_vmem [thread:$0]  (!%p1171_p11), %s1450_s2, 512, %s1164_s8, [#allocation8], %s1067_s21, %s1067_s21, %s1068_s22  }
  0x31   : > { %p31_p2 = scmp.eq.s32.totalorder %s30_s12, 0  ;;  %p40_p1 = scmp.ne.s32.totalorder %s1060_s25, %s1056_s24 }
  0x32   : > { %p41_p4 = scmp.eq.s32.totalorder %s1064_s26, 0  ;;  %p839_p6 = scmp.lt.s32.totalorder %s1064_s26, 2 }
  0x33   : > { %s1207_s13 = scalar_select %p31_p2, %s1060_s25, %s33_s11  }
  0x34   : > { %p42_p8 = por %p41_p4, %p40_p1  ;;  %p1452_p10 = scmp.eq.s32.totalorder %s1141_s5, 1 }
  0x35   : > { %1451 = sst [smem:[#allocation15_spill]] %s1207_s13  ;;  %s228_s15 = sand.u32 1, %s1060_s25  }
  0x36   : > { %p1211_p12 = por %p1452_p10, %p40_p1  ;;  %s794_s16 = sshll.u32 %s1064_s26, 7 }
  0x37   : > { %s1217_s17 = sshll.u32 %s228_s15, 3  ;;  %s1222_s8 = scalar_lea.hbm %s1434_s0, %s794_s16 }
  0x38   : > { %s1453_s14 = scalar_select %p1211_p12, 1, 0 }
  0x39   : > { %s232_s11 = scalar_lea.vmem [#allocation4], %s1217_s17  ;;  %p1225_p11 = pnand %p839_p6, %p42_p8 }
  0x3a   : > { %s240_s12 = sshll.u32 %s232_s11, 4  ;;  %s1234_s22 = scalar_lea.hbm %s1435_s1, %s794_s16  ;;  %s1229_s12 = int_to_ptr.vmem [resolvable:$true] %s240_s12 }
  0x3b   : > { %s229_s27 = scalar_lea.sflag [#allocation5], %s228_s15  ;;  %s930_s7 = scalar_lea.hbm %s1222_s8, 128 }
  0x3c   : > { %p931_p13 = scmp.ne.s32.totalorder %s1222_s8, %s930_s7  ;;  %p932_p0 = pneg %p1225_p11 }
  0x3d   : > { %s935_s11 = scalar_lea.hbm %s1434_s0, 256  ;;  %p936_p7 = scmp.lt.u32.totalorder %s1222_s8, %s1434_s0 }
  0x3e   : > { %p933_p3 = pnand %p932_p0, %p931_p13  ;;  %p937_p9 = scmp.lt.u32.totalorder %s935_s11, %s930_s7 }
  0x3f   : > { %p939_p1 = scmp.lt.u32.totalorder %s930_s7, %s1222_s8 }
  0x40   : > { %p934_p5 = pneg %p933_p3  ;;  %p938_p2 = por %p937_p9, %p936_p7 }
  0x42   : > { %p940_p4 = por %p939_p1, %p938_p2 }
  0x44   : > { %p941_p6 = pnand %p940_p4, %p934_p5 }
  0x46   : > { %944 = shalt.err (!%p941_p6)
}
  0x47   : > { %s945_s15 = scalar_lea.vmem %s1229_s12, 128  ;;  %s1069_s16 = smov [#allocation4]  }
  0x48   : > { %p946_p8 = scmp.ne.s32.totalorder %s1229_s12, %s945_s15  ;;  %s950_s20 = sshll.u32 %s1069_s16, 4  ;;  %s951_s20 = int_to_ptr.vmem [resolvable:$false] %s950_s20 }
  0x49   : > { %s952_s2 = scalar_lea.vmem %s951_s20, 256  ;;  %p953_p3 = scmp.lt.s32.totalorder %s1229_s12, %s951_s20 }
  0x4a   : > { %p948_p10 = pnand %p946_p8, %p932_p0  ;;  %p954_p7 = scmp.lt.s32.totalorder %s952_s2, %s945_s15 }
  0x4c   : > { %p949_p13 = pneg %p948_p10  ;;  %p955_p9 = por %p954_p7, %p953_p3 }
  0x4e   : > { %p956_p2 = pnand %p955_p9, %p949_p13 }
  0x50   : > { %959 = shalt.err (!%p956_p2)
}
  0x51   : > { %830 = dma.hbm_to_vmem [thread:$0]  (!%p1225_p11), %s1222_s8, 128, %s1229_s12, %s229_s27  }
  0x52   : > { %s247_s13 = sand.u32 1, %s1064_s26   ;;  %s251_s21 = scalar_lea.vmem [#allocation7], %s1217_s17 }
  0x53   : > { %s259_s7 = sshll.u32 %s251_s21, 4  ;;  %s248_s9 = scalar_lea.sflag [#allocation8], %s247_s13  ;;  %s260_s7 = int_to_ptr.vmem [resolvable:$true] %s259_s7 }
  0x54   : > { %s960_s18 = scalar_lea.hbm %s1234_s22, 128  ;;  %s965_s16 = scalar_lea.hbm %s1435_s1, 256 }
  0x55   : > { %p961_p5 = scmp.ne.s32.totalorder %s1234_s22, %s960_s18  ;;  %p966_p6 = scmp.lt.u32.totalorder %s1234_s22, %s1435_s1 }
  0x56   : > { %p967_p8 = scmp.lt.u32.totalorder %s965_s16, %s960_s18  ;;  %p969_p13 = scmp.lt.u32.totalorder %s960_s18, %s1234_s22 }
  0x57   : > { %p963_p1 = pnand %p961_p5, %p932_p0 }
  0x58   : > { %p968_p10 = por %p967_p8, %p966_p6 }
  0x59   : > { %p964_p4 = pneg %p963_p1 }
  0x5a   : > { %p970_p3 = por %p969_p13, %p968_p10 }
  0x5c   : > { %p971_p7 = pnand %p970_p3, %p964_p4 }
  0x5e   : > { %974 = shalt.err (!%p971_p7)
}
  0x5f   : > { %s975_s17 = scalar_lea.vmem %s260_s7, 128  ;;  %s1070_s8 = smov [#allocation7]  }
  0x60   : > { %p976_p9 = scmp.ne.s32.totalorder %s260_s7, %s975_s17  ;;  %s980_s12 = sshll.u32 %s1070_s8, 4  ;;  %s981_s12 = int_to_ptr.vmem [resolvable:$false] %s980_s12 }
  0x61   : > { %s982_s27 = scalar_lea.vmem %s981_s12, 256  ;;  %p983_p1 = scmp.lt.s32.totalorder %s260_s7, %s981_s12 }
  0x62   : > { %p978_p2 = pnand %p976_p9, %p932_p0  ;;  %p984_p12 = scmp.lt.s32.totalorder %s982_s27, %s975_s17 }
  0x64   : > { %p979_p5 = pneg %p978_p2  ;;  %p985_p6 = por %p984_p12, %p983_p1 }
  0x66   : > { %p986_p8 = pnand %p985_p6, %p979_p5 }
  0x68   : > { %989 = shalt.err (!%p986_p8)
}
  0x69   : > { %833 = dma.hbm_to_vmem [thread:$0]  (!%p1225_p11), %s1234_s22, 128, %s260_s7, %s248_s9  }
  0x6a   : > { %p1455_p4 = scmp.ne.s32.totalorder %s1448_s30, 0 }
  0x6b   : > { %s1285_s13 = sand.u32 (!%p1455_p4), 1, %s1056_s24   ;;  %p1456_p12 = scmp.ne.s32.totalorder (!%p1455_p4), %s1446_s28, 0 }
  0x6c   : > { %268 = sbr.rel (%p1455_p4) target bundleno = 876 (0x36c), region = 44  ;;  %s1288_s21 = sshll.u32 (!%p1455_p4), %s1285_s13, 3 }
  0x6d   : > { %s271_s18 = scalar_lea.sflag (!%p1455_p4), [#allocation5], %s1285_s13  ;;  %s274_s11 = scalar_lea.vmem (!%p1455_p4), [#allocation4], %s1288_s21 }
  0x73   : > { %1035 = dma.done.wait (%p1456_p12), %s271_s18, 128  }
  0x74   : > { %1037 = vsyncadd (%p1456_p12), %s271_s18, 4294967168  ;;  %s279_s30 = sand.u32 1, %s1141_s5   ;;  %s283_s22 = scalar_lea.vmem [#allocation7], %s1288_s21 }
  0x75   : > { %s280_s19 = scalar_lea.sflag [#allocation8], %s279_s30 }
  0x76   : > { %1039 = dma.done.wait (%p1456_p12), %s280_s19, 128  }
  0x77   : > { %1041 = vsyncadd (%p1456_p12), %s280_s19, 4294967168  ;;  %p1457_p11 = scmp.eq.s32.totalorder %s1141_s5, 0 }
  0x79   : > { %1043 = dma.done.wait (%p1457_p11), [#allocation8], 512   ;;  %p1458_p0 = pmov %p1457_p11 }
  0x7a   : > { %v1306_v0 = vld [vmem:[%s274_s11] sm:$0xff]  ;;  %v1308_v1 = vld [vmem:[%s283_s22] sm:$0xff]  ;;  %vm329_vm0 = vcmask 1043456   ;;  %s1071_s28 = smov 16   ;;  %s1072_s7 = smov 17   ;;  %v1079_v33 = vmov 0.0   ;;  %v372_v36 = vlaneseq }
  0x7b   : > { %1045 = vsyncadd (%p1458_p0), [#allocation8], 4294966784  ;;  %v324_v2 = vcombine.high %v1306_v0, %v1306_v0  ;;  %v327_v3 = vcombine.low %v1308_v1, %v1308_v1  ;;  %s1073_s9 = smov 127   ;;  %s1074_s15 = smov 113   ;;  %626 = vmatprep.mubr.f32.mxu0 %v1079_v33  ;;  %v1080_v34 = vmov 0   ;;  %v1344_v41 = vld [vmem:[#allocation9] sm:$0xff] }
  0x7c   : > { %s1075_s16 = smov 112   ;;  %s1076_s20 = smov 15   ;;  %887 = vset.pattern.permute.xlu1 %v1080_v34  ;;  %888 = vset.pattern.permute.xlu0 %v1080_v34  ;;  %v534_v35 = vld [vmem:[%s1438_s4] sm:$0xf]  ;;  %v1339_v37 = vshrl.u32 %v372_v36, 7  ;;  %v1341_v39 = vand.u32 127, %v372_v36 }
  0x7d   : > { %v330_v4 = vsel %vm329_vm0, %v1306_v0, %v327_v3  ;;  %v331_v5 = vsel %vm329_vm0, %v324_v2, %v1308_v1  ;;  %s1077_s2 = smov 111   ;;  %s1078_s17 = smov 1   ;;  %v1347_v43 = vld [vmem:[#allocation9 + $0x8] sm:$0xff]  ;;  %vm558_vm9 = vcmask 588800  }
  0x7e   : > { %v332_v6 = vadd.f32 %v331_v5, %v330_v4  ;;  %v379_v40 = vsub.s32 0, %v1339_v37  ;;  %v398_v42 = vsub.s32 1, %v1339_v37  ;;  %vm374_vm1 = vcmp.lt.s32.totalorder %v1341_v39, 17  ;;  %s532_s11 = sld [smem:[#allocation3]]  ;;  %s796_s30 = sshll.u32 %s1141_s5, 7 }
  0x7f   : > { %vm393_vm2 = vcmp.lt.s32.totalorder %v1341_v39, 16  ;;  %v418_v63 = vsub.s32 2, %v1339_v37  ;;  %v438_v2 = vsub.s32 3, %v1339_v37  ;;  %vm413_vm3 = vcmp.lt.s32.totalorder %v1341_v39, 15  ;;  %s320_s19 = scalar_lea.vmem [#allocation10], %s1288_s21  ;;  %p1459_p13 = scmp.ne.s32.totalorder %s1453_s14, 0 }
  0x80   : > { %333 = vadd.xlane.f32.xlu0 %v332_v6  ;;  %v380_v45 = vrot.slane %v1344_v41, %v379_v40  ;;  %v399_v46 = vrot.slane %v1344_v41, %v398_v42  ;;  %v384_v47 = vrot.slane %v1347_v43, %v379_v40  ;;  %v403_v48 = vrot.slane %v1347_v43, %v398_v42  ;;  %s669_s22 = sshll.u32 %s320_s19, 4  ;;  %s1081_s5 = smov [#allocation10]   ;;  %s1392_s22 = int_to_ptr.vmem [resolvable:$true] %s669_s22 }
  0x81   : > { %vm433_vm4 = vcmp.lt.s32.totalorder %v1341_v39, 1  ;;  %vm456_vm5 = vcmp.lt.s32.totalorder %v1341_v39, 127  ;;  %vm476_vm6 = vcmp.lt.s32.totalorder %v1341_v39, 113  ;;  %vm496_vm7 = vcmp.lt.s32.totalorder %v1341_v39, 112  ;;  %s994_s21 = sshll.u32 %s1081_s5, 4  ;;  %s995_s21 = int_to_ptr.vmem [resolvable:$false] %s994_s21 }
  0x82   : > { %vm516_vm8 = vcmp.lt.s32.totalorder %v1341_v39, 111  ;;  %v533_v39 = vld [vmem:[%s1437_s3] sm:$0xf]  ;;  %p997_p9 = scmp.lt.s32.totalorder %s1392_s22, %s995_s21 }
 0x10d   : > { %v334_v7 = vpop.xlane.xlu0 %333 }
 0x10e   : > { %v336_v8 = vmul.f32 0.00390625, %v334_v7  ;;  %v423_v7 = vrot.slane %v1347_v43, %v418_v63 }
 0x110   : > { %v337_v9 = vsub.f32 %v330_v4, %v336_v8  ;;  %v338_v10 = vsub.f32 %v331_v5, %v336_v8  ;;  %v439_v8 = vrot.slane %v1344_v41, %v438_v2 }
 0x112   : > { %v339_v11 = vmul.f32 %v337_v9, %v337_v9  ;;  %v340_v12 = vmul.f32 %v338_v10, %v338_v10  ;;  %v443_v9 = vrot.slane %v1347_v43, %v438_v2 }
 0x114   : > { %v341_v13 = vadd.f32 %v340_v12, %v339_v11 }
 0x116   : > { %342 = vadd.xlane.f32.xlu0 %v341_v13 }
 0x1a3   : > { %v343_v14 = vpop.xlane.xlu0 %342 }
 0x1a4   : > { %v345_v15 = vmul.f32 0.003921569, %v343_v14 }
 0x1a6   : > { %v346_v16 = vadd.f32 0.0001, %v345_v15 }
 0x1a8   : > { %v347_v17 = vmul.f32 4.0, %v346_v16 }
 0x1aa   : > { %892 = vrcp.f32 %v347_v17 }
 0x1b4   : > { %v893_v18 = vpop.eup %892 }
 0x1b5   : > { %v350_v19 = vmul.f32 %v893_v18, %v339_v11  ;;  %v351_v20 = vmul.f32 %v893_v18, %v340_v12 }
 0x1b7   : > { %v352_v21 = vadd.f32 0.5, %v350_v19  ;;  %v353_v22 = vadd.f32 0.5, %v351_v20 }
 0x1b9   : > { %v354_v23 = vmul.f32 0.5, %v352_v21  ;;  %v355_v24 = vmul.f32 0.5, %v353_v22 }
 0x1bb   : > { %894 = vtanh.f32 %v354_v23 }
 0x1bc   : > { %896 = vtanh.f32 %v355_v24 }
 0x1c5   : > { %v895_v25 = vpop.eup %894 }
 0x1c6   : > { %v897_v26 = vpop.eup %896  ;;  %v358_v27 = vmul.f32 0.5, %v895_v25 }
 0x1c7   : > { %v359_v28 = vmul.f32 0.5, %v897_v26 }
 0x1c8   : > { %v360_v29 = vadd.f32 0.5, %v358_v27  ;;  %v481_v27 = vsub.s32 6, %v1339_v37 }
 0x1c9   : > { %v361_v30 = vadd.f32 0.5, %v359_v28 }
 0x1ca   : > { %v1316_v31 = vmul.f32 %v360_v29, %v330_v4  ;;  %v419_v4 = vrot.slane %v1344_v41, %v418_v63  ;;  %v482_v36 = vrot.slane %v1344_v41, %v481_v27  ;;  %v486_v40 = vrot.slane %v1347_v43, %v481_v27 }
 0x1cb   : > { %v1320_v32 = vmul.f32 %v361_v30, %v331_v5  ;;  %v461_v5 = vsub.s32 5, %v1339_v37  ;;  %v501_v30 = vsub.s32 7, %v1339_v37 }
 0x1cc   : > { %389 = vrot.lane.b32.xlu0 %v1316_v31, %s1071_s28  ;;  %368 = vrot.lane.b32.xlu1 %v1316_v31, %s1072_s7 }
 0x1cd   : > { %v462_v15 = vrot.slane %v1344_v41, %v461_v5  ;;  %v466_v16 = vrot.slane %v1347_v43, %v461_v5  ;;  %v502_v42 = vrot.slane %v1344_v41, %v501_v30  ;;  %v506_v37 = vrot.slane %v1347_v43, %v501_v30 }
 0x1d0   : > { %454 = vrot.lane.b32.xlu0 %v1320_v32, %s1073_s9  ;;  %370 = vrot.lane.b32.xlu1 %v1320_v32, %s1072_s7 }
 0x1d4   : > { %474 = vrot.lane.b32.xlu0 %v1320_v32, %s1074_s15  ;;  %391 = vrot.lane.b32.xlu1 %v1320_v32, %s1071_s28 }
 0x1d8   : > { %494 = vrot.lane.b32.xlu0 %v1320_v32, %s1075_s16  ;;  %409 = vrot.lane.b32.xlu1 %v1316_v31, %s1076_s20 }
 0x1dc   : > { %514 = vrot.lane.b32.xlu0 %v1320_v32, %s1077_s2  ;;  %411 = vrot.lane.b32.xlu1 %v1320_v32, %s1076_s20  ;;  %s996_s20 = scalar_lea.vmem %s995_s21, 256 }
 0x1e0   : > { %429 = vrot.lane.b32.xlu1 %v1316_v31, %s1078_s17 }
 0x1e4   : > { %431 = vrot.lane.b32.xlu1 %v1320_v32, %s1078_s17 }
 0x1e8   : > { %452 = vrot.lane.b32.xlu1 %v1316_v31, %s1073_s9  ;;  %s1390_s9 = scalar_lea.hbm %s1440_s6, %s796_s30 }
 0x1ec   : > { %472 = vrot.lane.b32.xlu1 %v1316_v31, %s1074_s15  ;;  %s655_s15 = scalar_lea.sflag [#allocation6], %s1285_s13 }
 0x1f0   : > { %492 = vrot.lane.b32.xlu1 %v1316_v31, %s1075_s16  ;;  %s990_s16 = scalar_lea.vmem %s1392_s22, 128 }
 0x1f1   : > { %p991_p10 = scmp.ne.s32.totalorder %s1392_s22, %s990_s16  ;;  %p998_p2 = scmp.lt.s32.totalorder %s996_s20, %s990_s16 }
 0x1f3   : > { %p992_p3 = pnand %p991_p10, %p1459_p13  ;;  %p999_p5 = por %p998_p2, %p997_p9 }
 0x1f4   : > { %512 = vrot.lane.b32.xlu1 %v1316_v31, %s1077_s2 }
 0x1f5   : > { %p993_p7 = pneg %p992_p3 }
 0x1f7   : > { %p1000_p1 = pnand %p999_p5, %p993_p7 }
 0x1f8   : > { %555 = vperm.xlu1 %887, %v534_v35  }
 0x23e   : > { %v369_v38 = vpop.permute.xlu1 %368  ;;  %v390_v51 = vpop.permute.xlu0 %389 }
 0x242   : > { %v371_v44 = vpop.permute.xlu1 %370  ;;  %v455_v6 = vpop.permute.xlu0 %454 }
 0x243   : > { %v375_v49 = vsel %vm374_vm1, %v369_v38, %v371_v44  ;;  %v376_v50 = vsel %vm374_vm1, %v371_v44, %v369_v38 }
 0x244   : > { %v385_v55 = vmul.f32 %v380_v45, %v376_v50  ;;  %v386_v57 = vmul.f32 %v384_v47, %v375_v49 }
 0x246   : > { %v392_v52 = vpop.permute.xlu1 %391  ;;  %v475_v21 = vpop.permute.xlu0 %474 }
 0x247   : > { %v394_v53 = vsel %vm393_vm2, %v390_v51, %v392_v52  ;;  %v395_v54 = vsel %vm393_vm2, %v392_v52, %v390_v51  ;;  %v787_v51 = vld [vmem:[#allocation9 + $0x18] ss:$0 sm:$0xff] }
 0x248   : > { %v404_v56 = vmul.f32 %v399_v46, %v395_v54  ;;  %v405_v58 = vmul.f32 %v403_v48, %v394_v53 }
 0x24a   : > { %v410_v59 = vpop.permute.xlu1 %409  ;;  %v797_v60 = vpack.c.bf16 %v405_v58, %v386_v57  ;;  %v799_v61 = vpack.c.bf16 %v404_v56, %v385_v55  ;;  %v495_v38 = vpop.permute.xlu0 %494  ;;  %v786_v56 = vld [vmem:[#allocation9 + $0x10] ss:$0 sm:$0xff] }
 0x24c   : > { %798 = vmatprep.subr.bf16.mxu0 %v797_v60 }
 0x24d   : > { %800 = vmatpush1.bf16.msra.mxu0 %v799_v61 }
 0x24e   : > { %v412_v62 = vpop.permute.xlu1 %411  ;;  %v515_v52 = vpop.permute.xlu0 %514 }
 0x24f   : > { %v414_v10 = vsel %vm413_vm3, %v410_v59, %v412_v62  ;;  %v415_v11 = vsel %vm413_vm3, %v412_v62, %v410_v59 }
 0x250   : > { %v424_v17 = vmul.f32 %v419_v4, %v415_v11  ;;  %v425_v18 = vmul.f32 %v423_v7, %v414_v10  ;;  %v645_v10 = vstv %s532_s11 }
 0x252   : > { %v430_v3 = vpop.permute.xlu1 %429 }
 0x256   : > { %v432_v12 = vpop.permute.xlu1 %431 }
 0x257   : > { %v434_v13 = vsel %vm433_vm4, %v430_v3, %v432_v12  ;;  %v435_v14 = vsel %vm433_vm4, %v432_v12, %v430_v3 }
 0x258   : > { %v444_v19 = vmul.f32 %v439_v8, %v435_v14  ;;  %v445_v20 = vmul.f32 %v443_v9, %v434_v13  ;;  %v641_v8 = vcombine.high %v1308_v1, %v1308_v1 }
 0x25a   : > { %v453_v22 = vpop.permute.xlu1 %452  ;;  %v801_v23 = vpack.c.bf16 %v445_v20, %v425_v18  ;;  %v803_v24 = vpack.c.bf16 %v444_v19, %v424_v17 }
 0x25b   : > { %v457_v25 = vsel %vm456_vm5, %v453_v22, %v455_v6  ;;  %v458_v26 = vsel %vm456_vm5, %v455_v6, %v453_v22 }
 0x25c   : > { %v467_v28 = vmul.f32 %v462_v15, %v457_v25  ;;  %v468_v29 = vmul.f32 %v466_v16, %v458_v26  ;;  %802 = vmatprep.subr.bf16.mxu0 %v801_v23 }
 0x25d   : > { %804 = vmatpush1.bf16.msra.mxu0 %v803_v24 }
 0x25e   : > { %v473_v33 = vpop.permute.xlu1 %472  ;;  %v805_v34 = vpack.c.bf16 %v468_v29, %v1320_v32  ;;  %v807_v35 = vpack.c.bf16 %v467_v28, %v1316_v31 }
 0x25f   : > { %v477_v44 = vsel %vm476_vm6, %v473_v33, %v475_v21  ;;  %v478_v45 = vsel %vm476_vm6, %v475_v21, %v473_v33 }
 0x260   : > { %806 = vmatprep.subr.bf16.mxu0 %v805_v34  ;;  %v487_v31 = vmul.f32 %v482_v36, %v477_v44  ;;  %v488_v48 = vmul.f32 %v486_v40, %v478_v45 }
 0x261   : > { %808 = vmatpush1.bf16.msra.mxu0 %v807_v35 }
 0x262   : > { %v493_v46 = vpop.permute.xlu1 %492 }
 0x263   : > { %v497_v47 = vsel %vm496_vm7, %v493_v46, %v495_v38  ;;  %v498_v32 = vsel %vm496_vm7, %v495_v38, %v493_v46 }
 0x264   : > { %v507_v49 = vmul.f32 %v502_v42, %v497_v47  ;;  %v508_v50 = vmul.f32 %v506_v37, %v498_v32 }
 0x266   : > { %v513_v53 = vpop.permute.xlu1 %512  ;;  %v809_v54 = vpack.c.bf16 %v508_v50, %v488_v48  ;;  %v811_v55 = vpack.c.bf16 %v507_v49, %v487_v31 }
 0x267   : > { %v518_v41 = vsel %vm516_vm8, %v515_v52, %v513_v53  ;;  %v517_v43 = vsel %vm516_vm8, %v513_v53, %v515_v52 }
 0x268   : > { %v528_v57 = vmul.f32 %v787_v51, %v518_v41  ;;  %810 = vmatprep.subr.bf16.mxu0 %v809_v54  ;;  %v527_v58 = vmul.f32 %v786_v56, %v517_v43 }
 0x269   : > { %812 = vmatpush1.bf16.msra.mxu0 %v811_v55 }
 0x26a   : > { %578 = vmatprep.subr.mxu0 %v528_v57 }
 0x26d   : > { %579 = vmatpush1.msra.mxu0 %v527_v58 }
 0x26e   : > { %788 = vmatmul.mubr.msk.f32.vlgmr.msra.gmra.mrb[0].mxu0 %vm558_vm9, %v533_v39 }
 0x277   : > { %v556_v59 = vpop.permute.xlu1 %555 }
 0x341   : > { %v628_v60 = vpop.f32.mrb[0].mxu0 }
 0x342   : > { %v629_v61 = vadd.f32 %v628_v60, %v556_v59  ;;  %v630_v62 = vpop.f32.mrb[1].mxu0 }
 0x343   : > { %v631_v63 = vadd.f32 %v630_v62, %v556_v59 }
 0x344   : > { %v633_v2 = vmul.f32 0.5, %v629_v61 }
 0x345   : > { %v634_v3 = vmul.f32 0.5, %v631_v63 }
 0x346   : > { %898 = vtanh.f32 %v633_v2 }
 0x347   : > { %900 = vtanh.f32 %v634_v3 }
 0x350   : > { %v899_v4 = vpop.eup %898 }
 0x351   : > { %v901_v5 = vpop.eup %900  ;;  %v637_v6 = vmul.f32 0.5, %v899_v4 }
 0x352   : > { %v638_v7 = vmul.f32 0.5, %v901_v5 }
 0x353   : > { %v639_v9 = vadd.f32 0.5, %v637_v6 }
 0x354   : > { %v640_v11 = vadd.f32 0.5, %v638_v7 }
 0x355   : > { %v643_v12 = vmul.f32 %v639_v9, %v1308_v1 }
 0x356   : > { %v644_v13 = vmul.f32 %v641_v8, %v640_v11 }
 0x357   : > { %v646_v14 = vmul.f32 %v645_v10, %v643_v12 }
 0x358   : > { %v647_v15 = vmul.f32 %v645_v10, %v644_v13 }
 0x35a   : > { %v650_v16 = vcombine.low %v646_v14, %v647_v15 }
 0x35c   : > { %v652_v17 = vadd.f32 %v650_v16, %v1306_v0 }
 0x35e   : > { %653 = vst [vmem:[%s320_s19] sm:$0xff] %v652_v17 }
 0x35f   : > { %1003 = shalt.err (!%p1000_p1)
}
 0x360   : > { %s1004_s13 = scalar_lea.hbm %s1390_s9, 128  ;;  %s1008_s8 = scalar_lea.hbm %s1440_s6, 256 }
 0x361   : > { %p1005_p6 = scmp.ne.s32.totalorder %s1390_s9, %s1004_s13  ;;  %p1009_p12 = scmp.lt.u32.totalorder %s1390_s9, %s1440_s6 }
 0x362   : > { %p1010_p11 = scmp.lt.u32.totalorder %s1008_s8, %s1004_s13  ;;  %p1012_p10 = scmp.lt.u32.totalorder %s1004_s13, %s1390_s9 }
 0x363   : > { %p1006_p8 = pnand %p1005_p6, %p1459_p13 }
 0x364   : > { %p1011_p0 = por %p1010_p11, %p1009_p12 }
 0x365   : > { %p1007_p4 = pneg %p1006_p8 }
 0x366   : > { %p1013_p3 = por %p1012_p10, %p1011_p0 }
 0x368   : > { %p1014_p7 = pnand %p1013_p3, %p1007_p4 }
 0x36a   : > { %1017 = shalt.err (!%p1014_p7)
}
 0x36b   : > { %821 = dma.vmem_to_hbm [thread:$0]  (%p1459_p13), %s1392_s22, 128, %s1390_s9, %s655_s15  }
 0x36c PF: > { %s681_s18 = sand.u32 1, %s1052_s23   ;;  %p1460_p9 = scmp.ne.s32.totalorder %s1447_s29, 0 }
 0x36d   : > { %p1461_p2 = scmp.ge.s32.totalorder %s1064_s26, 2  ;;  %s682_s11 = scalar_lea.sflag [#allocation6], %s681_s18 }
 0x36f   : > { %p835_p5 = pnand %p1461_p2, %p1460_p9 }
 0x371   : > { %1047 = dma.done.wait (!%p835_p5), %s682_s11, 128  }
 0x372   : > { %1049 = vsyncadd (!%p835_p5), %s682_s11, 4294967168  ;;  %s1462_s30 = sld [smem:[#allocation15_spill]]  ;;  %p23_p1 = scmp.ge.s32.totalorder %s1176_s10, 4  }
 0x373   : > { %s1463_s23 = smov %s1056_s24  ;;  %s1464_s24 = smov %s1060_s25 }
 0x374   : > { %s1466_s26 = smov %s1176_s10  ;;  %25 = sbr.rel (!%p23_p1) target bundleno = 10 (0xa), region = 114 }
 0x378   : > { %s1465_s25 = smov %s1462_s30 }
 0x37b   :  { %687 = vsyncpa [#allocation5], 1 }
 0x37c   :  { %689 = vsyncpa [#allocation5 + $0x1], 1 }
 0x37d   :  { %690 = vsyncpa [#allocation8], 1 }
 0x37e   :  { %692 = vsyncpa [#allocation8 + $0x1], 1 }
 0x37f   :  { %693 = vsyncpa [#allocation6], 1 }
 0x380   :  { %695 = vsyncpa [#allocation6 + $0x1], 1 }

</bundles_post_ra>
